<compile_context>
chip_gen: v7x
topology: tpu7x:2x2x1
jax: 0.10.0
libtpu: 0.0.40
codegen_flags: <defaults>
</compile_context>

<pallas_src>
import functools

import jax
import jax.numpy as jnp
from jax.experimental import pallas as pl
from jax.experimental.pallas import tpu as pltpu


def actor_kernel(x_ref, w1_ref, b1_ref, w2_ref, b2_ref, w3_ref, b3_ref, o_ref):
    # fc1 + relu  (x cast to bf16 for the MXU, weights already bf16, f32 acc)
    h1 = jnp.dot(x_ref[...].astype(jnp.bfloat16), w1_ref[...],
                 preferred_element_type=jnp.float32)
    h1 = jnp.maximum(h1 + b1_ref[...], 0.0)
    # fc2 + relu
    h2 = jnp.dot(h1.astype(jnp.bfloat16), w2_ref[...],
                 preferred_element_type=jnp.float32)
    h2 = jnp.maximum(h2 + b2_ref[...], 0.0)
    # fc3 (lane-dense: padded to a multiple of 128 output columns) + softmax.
    logits = jnp.dot(h2.astype(jnp.bfloat16), w3_ref[...],
                     preferred_element_type=jnp.float32)
    logits = logits + b3_ref[...]          # padded columns carry bias = -1e30
    m = jnp.max(logits, axis=-1, keepdims=True)
    e = jnp.exp(logits - m)                # padded columns underflow to 0
    denom = jnp.sum(e, axis=-1, keepdims=True)
    # Exact division: probabilities must sum to 1 to f32 precision.
    o_ref[...] = (e / denom).astype(o_ref.dtype)


def _round_up(n, m):
    return (n + m - 1) // m * m


@functools.partial(jax.jit, static_argnames=("block_b",))
def actor_forward(x, params, *, block_b=2048):
    """x: [B, num_states] float32. params: dict of (w1,b1,w2,b2,w3,b3), f32.

    Weights stored as [in, out] (transposed vs PyTorch) so y = x @ W + b.
    """
    B, num_states = x.shape
    num_actions = params["w3"].shape[1]
    n_pad = _round_up(num_actions, 128)

    # Pre-cast weights to bf16 (MXU fast path); biases stay f32.
    w1 = params["w1"].astype(jnp.bfloat16)
    w2 = params["w2"].astype(jnp.bfloat16)
    w3 = params["w3"].astype(jnp.bfloat16)
    b1 = params["b1"].astype(jnp.float32)
    b2 = params["b2"].astype(jnp.float32)
    b3 = params["b3"].astype(jnp.float32)

    # Lane-dense fc3: zero-pad weight columns; pad bias with a large *finite*
    # negative so padded logits give exp(...) == 0 (no inf-inf / NaN).
    if n_pad != num_actions:
        w3 = jnp.pad(w3, ((0, 0), (0, n_pad - num_actions)))
        b3 = jnp.pad(b3, ((0, 0), (0, n_pad - num_actions)),
                     constant_values=-1e30)

    # Batch tiling. Pad only to a sublane multiple of 8 (cheap / usually a
    # no-op for rollout-sized batches); a partial last block is handled by
    # Pallas bounds masking, avoiding a full-array pad copy of x.
    B8 = _round_up(B, 8)
    TB = min(block_b, B8)
    if B8 != B:
        x = jnp.pad(x, ((0, B8 - B), (0, 0)))
    grid = (pl.cdiv(B8, TB),)

    # Weights / biases use constant block indices -> stay VMEM-resident.
    def const(a):
        return pl.BlockSpec(a.shape, lambda i: (0,) * a.ndim)

    out = pl.pallas_call(
        actor_kernel,
        out_shape=jax.ShapeDtypeStruct((B8, n_pad), jnp.float32),
        grid=grid,
        in_specs=[
            pl.BlockSpec((TB, num_states), lambda i: (i, 0)),  # x: streamed
            const(w1), const(b1),
            const(w2), const(b2),
            const(w3), const(b3),
        ],
        out_specs=pl.BlockSpec((TB, n_pad), lambda i: (i, 0)),
        compiler_params=pltpu.CompilerParams(
            dimension_semantics=("parallel",)),
    )(x, w1, b1, w2, b2, w3, b3)

    return out[:B, :num_actions]


def init_params(key, num_states, num_actions):
    """Deterministic init mimicking nn.Linear's U(-1/sqrt(fan_in), +1/sqrt(fan_in))."""
    ks = jax.random.split(key, 6)

    def linear(kw, kb, fan_in, fan_out):
        bound = 1.0 / jnp.sqrt(float(fan_in))
        w = jax.random.uniform(kw, (fan_in, fan_out), jnp.float32, -bound, bound)
        b = jax.random.uniform(kb, (1, fan_out), jnp.float32, -bound, bound)
        return w, b

    w1, b1 = linear(ks[0], ks[1], num_states, 128)
    w2, b2 = linear(ks[2], ks[3], 128, 256)
    w3, b3 = linear(ks[4], ks[5], 256, num_actions)
    return {"w1": w1, "b1": b1, "w2": w2, "b2": b2, "w3": w3, "b3": b3}


def actor_ref(x, params, matmul_dtype=jnp.float32):
    """Pure-JAX reference. matmul_dtype=bf16 mirrors the kernel's MXU path."""
    def mm(a, w):
        return jnp.dot(a.astype(matmul_dtype), w.astype(matmul_dtype),
                       preferred_element_type=jnp.float32)
    h = jnp.maximum(mm(x, params["w1"]) + params["b1"], 0.0)
    h = jnp.maximum(mm(h, params["w2"]) + params["b2"], 0.0)
    logits = mm(h, params["w3"]) + params["b3"]
    return jax.nn.softmax(logits, axis=-1)


if __name__ == "__main__":
    num_states, num_actions = 32, 8
    key = jax.random.PRNGKey(0)
    k_x, k_p, k_x2 = jax.random.split(key, 3)
    params = init_params(k_p, num_states, num_actions)

    # Small batch (single tile, exercises full-block path).
    batch = 8
    x = jax.random.normal(k_x, (batch, num_states), jnp.float32)
    out = jax.block_until_ready(actor_forward(x, params))
    assert out.shape == (batch, num_actions)
    ref_bf16 = actor_ref(x, params, matmul_dtype=jnp.bfloat16)
    ref_f32 = actor_ref(x, params, matmul_dtype=jnp.float32)
    assert jnp.allclose(out, ref_bf16, atol=2e-3, rtol=2e-3)
    assert jnp.allclose(out, ref_f32, atol=5e-2, rtol=5e-2)
    assert jnp.allclose(jnp.sum(out, axis=-1), 1.0, atol=1e-3)

    # Larger batch (exercises TB < block_b path, no padding needed: 1000 % 8 == 0).
    batch2 = 1000
    x2 = jax.random.normal(k_x2, (batch2, num_states), jnp.float32)
    out2 = jax.block_until_ready(actor_forward(x2, params))
    assert out2.shape == (batch2, num_actions)
    ref2 = actor_ref(x2, params, matmul_dtype=jnp.bfloat16)
    assert jnp.allclose(out2, ref2, atol=2e-3, rtol=2e-3)
    assert jnp.allclose(jnp.sum(out2, axis=-1), 1.0, atol=1e-3)

    # Ragged batch (padding to a multiple of 8 + slice-back path).
    batch3 = 37
    x3 = jax.random.normal(k_x2, (batch3, num_states), jnp.float32)
    out3 = jax.block_until_ready(actor_forward(x3, params))
    assert out3.shape == (batch3, num_actions)
    ref3 = actor_ref(x3, params, matmul_dtype=jnp.bfloat16)
    assert jnp.allclose(out3, ref3, atol=2e-3, rtol=2e-3)
    assert jnp.allclose(jnp.sum(out3, axis=-1), 1.0, atol=1e-3)

    print("KERNEL_OK")
</pallas_src>

<mosaic_0001>
module attributes {stable_mosaic.version = 11 : i64} {
  func.func @actor_kernel(%arg0: i32, %arg1: memref<8x32xf32, #tpu.memory_space<vmem>>, %arg2: memref<32x128xbf16, #tpu.memory_space<vmem>>, %arg3: memref<1x128xf32, #tpu.memory_space<vmem>>, %arg4: memref<128x256xbf16, #tpu.memory_space<vmem>>, %arg5: memref<1x256xf32, #tpu.memory_space<vmem>>, %arg6: memref<256x128xbf16, #tpu.memory_space<vmem>>, %arg7: memref<1x128xf32, #tpu.memory_space<vmem>>, %arg8: memref<8x128xf32, #tpu.memory_space<vmem>>) attributes {dimension_semantics = [#tpu.dimension_semantics<parallel>], iteration_bounds = array<i64: 1>, scalar_prefetch = 0 : i64, scratch_operands = 0 : i64, tpu.core_type = #tpu.core_type<tc>, window_params = [{transform_indices = @transform_0, window_bounds = array<i64: 8, 32>}, {pipeline_mode = #tpu.pipeline_mode<synchronous>, transform_indices = @transform_1, window_bounds = array<i64: 32, 128>}, {pipeline_mode = #tpu.pipeline_mode<synchronous>, transform_indices = @transform_2, window_bounds = array<i64: 1, 128>}, {pipeline_mode = #tpu.pipeline_mode<synchronous>, transform_indices = @transform_3, window_bounds = array<i64: 128, 256>}, {pipeline_mode = #tpu.pipeline_mode<synchronous>, transform_indices = @transform_4, window_bounds = array<i64: 1, 256>}, {pipeline_mode = #tpu.pipeline_mode<synchronous>, transform_indices = @transform_5, window_bounds = array<i64: 256, 128>}, {pipeline_mode = #tpu.pipeline_mode<synchronous>, transform_indices = @transform_6, window_bounds = array<i64: 1, 128>}, {transform_indices = @transform_7, window_bounds = array<i64: 8, 128>}]} {
    %c0 = arith.constant 0 : index
    %c0_0 = arith.constant 0 : index
    %0 = vector.load %arg1[%c0, %c0_0] : memref<8x32xf32, #tpu.memory_space<vmem>>, vector<8x32xf32>
    %1 = arith.truncf %0 : vector<8x32xf32> to vector<8x32xbf16>
    %c0_1 = arith.constant 0 : index
    %c0_2 = arith.constant 0 : index
    %2 = vector.load %arg2[%c0_1, %c0_2] : memref<32x128xbf16, #tpu.memory_space<vmem>>, vector<32x128xbf16>
    %cst = arith.constant dense<0.000000e+00> : vector<8x128xf32>
    %3 = tpu.matmul %1, %2, %cst {dimension_numbers = #tpu.dot_dimension_numbers<[1], [0], [0], [1], [0, 0, 1, 1], [], []>} : vector<8x32xbf16>, vector<32x128xbf16>, vector<8x128xf32> -> vector<8x128xf32>
    %c0_3 = arith.constant 0 : index
    %c0_4 = arith.constant 0 : index
    %4 = vector.load %arg3[%c0_3, %c0_4] : memref<1x128xf32, #tpu.memory_space<vmem>>, vector<1x128xf32>
    %5 = vector.broadcast %4 : vector<1x128xf32> to vector<8x128xf32>
    %6 = arith.addf %3, %5 : vector<8x128xf32>
    %cst_5 = arith.constant 0.000000e+00 : f32
    %7 = vector.broadcast %cst_5 : f32 to vector<8x128xf32>
    %8 = arith.maximumf %6, %7 : vector<8x128xf32>
    %9 = arith.truncf %8 : vector<8x128xf32> to vector<8x128xbf16>
    %c0_6 = arith.constant 0 : index
    %c0_7 = arith.constant 0 : index
    %10 = vector.load %arg4[%c0_6, %c0_7] : memref<128x256xbf16, #tpu.memory_space<vmem>>, vector<128x256xbf16>
    %cst_8 = arith.constant dense<0.000000e+00> : vector<8x256xf32>
    %11 = tpu.matmul %9, %10, %cst_8 {dimension_numbers = #tpu.dot_dimension_numbers<[1], [0], [0], [1], [0, 0, 1, 1], [], []>} : vector<8x128xbf16>, vector<128x256xbf16>, vector<8x256xf32> -> vector<8x256xf32>
    %c0_9 = arith.constant 0 : index
    %c0_10 = arith.constant 0 : index
    %12 = vector.load %arg5[%c0_9, %c0_10] : memref<1x256xf32, #tpu.memory_space<vmem>>, vector<1x256xf32>
    %13 = vector.broadcast %12 : vector<1x256xf32> to vector<8x256xf32>
    %14 = arith.addf %11, %13 : vector<8x256xf32>
    %cst_11 = arith.constant 0.000000e+00 : f32
    %15 = vector.broadcast %cst_11 : f32 to vector<8x256xf32>
    %16 = arith.maximumf %14, %15 : vector<8x256xf32>
    %17 = arith.truncf %16 : vector<8x256xf32> to vector<8x256xbf16>
    %c0_12 = arith.constant 0 : index
    %c0_13 = arith.constant 0 : index
    %18 = vector.load %arg6[%c0_12, %c0_13] : memref<256x128xbf16, #tpu.memory_space<vmem>>, vector<256x128xbf16>
    %cst_14 = arith.constant dense<0.000000e+00> : vector<8x128xf32>
    %19 = tpu.matmul %17, %18, %cst_14 {dimension_numbers = #tpu.dot_dimension_numbers<[1], [0], [0], [1], [0, 0, 1, 1], [], []>} : vector<8x256xbf16>, vector<256x128xbf16>, vector<8x128xf32> -> vector<8x128xf32>
    %c0_15 = arith.constant 0 : index
    %c0_16 = arith.constant 0 : index
    %20 = vector.load %arg7[%c0_15, %c0_16] : memref<1x128xf32, #tpu.memory_space<vmem>>, vector<1x128xf32>
    %21 = vector.broadcast %20 : vector<1x128xf32> to vector<8x128xf32>
    %22 = arith.addf %19, %21 : vector<8x128xf32>
    %cst_17 = arith.constant dense<0xFF800000> : vector<8xf32>
    %23 = vector.multi_reduction <maximumf>, %22, %cst_17 [1] : vector<8x128xf32> to vector<8xf32>
    %24 = vector.shape_cast %23 : vector<8xf32> to vector<8x1xf32>
    %25 = vector.broadcast %24 : vector<8x1xf32> to vector<8x128xf32>
    %26 = arith.subf %22, %25 : vector<8x128xf32>
    %27 = math.exp %26 : vector<8x128xf32>
    %cst_18 = arith.constant dense<0.000000e+00> : vector<8xf32>
    %28 = vector.multi_reduction <add>, %27, %cst_18 [1] : vector<8x128xf32> to vector<8xf32>
    %29 = vector.shape_cast %28 : vector<8xf32> to vector<8x1xf32>
    %30 = vector.broadcast %29 : vector<8x1xf32> to vector<8x128xf32>
    %31 = arith.divf %27, %30 : vector<8x128xf32>
    %c0_19 = arith.constant 0 : index
    %c0_20 = arith.constant 0 : index
    %32 = vector.load %arg8[%c0_19, %c0_20] : memref<8x128xf32, #tpu.memory_space<vmem>>, vector<8x128xf32>
    tpu.vector_store %arg8[%c0_19, %c0_20], %31 {strides = array<i32>} : memref<8x128xf32, #tpu.memory_space<vmem>>, vector<8x128xf32>,
    return
  }
  func.func @transform_0(%arg0: i32) -> (i32, i32) {
    %c0_i32 = arith.constant 0 : i32
    %c0_i32_0 = arith.constant 0 : i32
    return %arg0, %c0_i32 : i32, i32
  }
  func.func @transform_1(%arg0: i32) -> (i32, i32) {
    %c0_i32 = arith.constant 0 : i32
    %c0_i32_0 = arith.constant 0 : i32
    %c0_i32_1 = arith.constant 0 : i32
    return %c0_i32, %c0_i32_0 : i32, i32
  }
  func.func @transform_2(%arg0: i32) -> (i32, i32) {
    %c0_i32 = arith.constant 0 : i32
    %c0_i32_0 = arith.constant 0 : i32
    %c0_i32_1 = arith.constant 0 : i32
    return %c0_i32, %c0_i32_0 : i32, i32
  }
  func.func @transform_3(%arg0: i32) -> (i32, i32) {
    %c0_i32 = arith.constant 0 : i32
    %c0_i32_0 = arith.constant 0 : i32
    %c0_i32_1 = arith.constant 0 : i32
    return %c0_i32, %c0_i32_0 : i32, i32
  }
  func.func @transform_4(%arg0: i32) -> (i32, i32) {
    %c0_i32 = arith.constant 0 : i32
    %c0_i32_0 = arith.constant 0 : i32
    %c0_i32_1 = arith.constant 0 : i32
    return %c0_i32, %c0_i32_0 : i32, i32
  }
  func.func @transform_5(%arg0: i32) -> (i32, i32) {
    %c0_i32 = arith.constant 0 : i32
    %c0_i32_0 = arith.constant 0 : i32
    %c0_i32_1 = arith.constant 0 : i32
    return %c0_i32, %c0_i32_0 : i32, i32
  }
  func.func @transform_6(%arg0: i32) -> (i32, i32) {
    %c0_i32 = arith.constant 0 : i32
    %c0_i32_0 = arith.constant 0 : i32
    %c0_i32_1 = arith.constant 0 : i32
    return %c0_i32, %c0_i32_0 : i32, i32
  }
  func.func @transform_7(%arg0: i32) -> (i32, i32) {
    %c0_i32 = arith.constant 0 : i32
    %c0_i32_0 = arith.constant 0 : i32
    return %arg0, %c0_i32 : i32, i32
  }
}

</mosaic_0001>

<bundles_post_ra>
// kernel: actor_forward.1
= control target key start
LH: loop header
LB: loop body
LE: loop exit
PB: predicated region body
PF: predicated region fallthrough
CT: control target
= control target key end

     0   :  { %v595_v1 = vmov 0.0   ;;  %vm596_vm0 = vmmov 0   ;;  %vm53_vm1 = vcmask 261120   ;;  %s765_s0 = inlined_call_operand.vmem [shape: f32[8,32], index: 0, kind: input, shape index: {}]   ;;  %s766_s1 = inlined_call_operand.vmem [shape: bf16[32,128], index: 1, kind: input, shape index: {}]   ;;  %s767_s2 = inlined_call_operand.vmem [shape: f32[1,128], index: 2, kind: input, shape index: {}]   ;;  %s768_s3 = inlined_call_operand.vmem [shape: bf16[128,256], index: 3, kind: input, shape index: {}]   ;;  %s769_s4 = inlined_call_operand.vmem [shape: f32[1,256], index: 4, kind: input, shape index: {}]   ;;  %s770_s5 = inlined_call_operand.vmem [shape: bf16[256,128], index: 5, kind: input, shape index: {}]   ;;  %s771_s6 = inlined_call_operand.vmem [shape: f32[1,128], index: 6, kind: input, shape index: {}]   ;;  %s772_s7 = inlined_call_operand.hbm [shape: f32[8,128], index: 7, kind: output, shape index: {}]  }
   0x1   :  { %v525_v0 = vld [vmem:[%s766_s1] sm:$0xff]   ;;  %513 = vmatprep.subr.bf16.mxu0 %v595_v1  ;;  %v526_v2 = vld [vmem:[%s766_s1 + $0x8] sm:$0xff]   ;;  %517 = vmatprep.mubr.msk.bf16.mxu0 %vm596_vm0, %v595_v1  ;;  %v530_v6 = vld [vmem:[%s768_s3 + $0x14] ss:$8 sps:$4 sm:$0xff]  }
   0x2   :  { %514 = vmatpush3.bf16.msra.mxu0 %v525_v0  ;;  %v28_v3 = vld [vmem:[%s765_s0] sm:$0xff]  ;;  %v532_v8 = vld [vmem:[%s768_s3 + $0x10] ss:$8 sps:$4 sm:$0xff]   ;;  %v536_v11 = vld [vmem:[%s768_s3 + $0x34] ss:$8 sps:$4 sm:$0xff]  }
   0x3   :  { %515 = vmatprep.subr.bf16.mxu0 %v595_v1  ;;  %v527_v4 = vld [vmem:[%s768_s3 + $0x4] ss:$8 sps:$4 sm:$0xff]   ;;  %v529_v5 = vld [vmem:[%s768_s3] ss:$8 sps:$4 sm:$0xff]   ;;  %v29_v7 = vpack.c.bf16 %v28_v3, %v28_v3  ;;  %v538_v12 = vld [vmem:[%s768_s3 + $0x30] ss:$8 sps:$4 sm:$0xff]  }
   0x4   :  { %207 = vmatprep.subr.bf16.mxu1 %v527_v4  ;;  %v533_v9 = vld [vmem:[%s768_s3 + $0x24] ss:$8 sps:$4 sm:$0xff]   ;;  %v535_v10 = vld [vmem:[%s768_s3 + $0x20] ss:$8 sps:$4 sm:$0xff]   ;;  %v542_v15 = vld [vmem:[%s768_s3 + $0x54] ss:$8 sps:$4 sm:$0xff]  }
   0x5   :  { %208 = vmatpush1.bf16.msra.mxu1 %v529_v5  ;;  %v539_v13 = vld [vmem:[%s768_s3 + $0x44] ss:$8 sps:$4 sm:$0xff]   ;;  %v541_v14 = vld [vmem:[%s768_s3 + $0x40] ss:$8 sps:$4 sm:$0xff]   ;;  %v544_v16 = vld [vmem:[%s768_s3 + $0x50] ss:$8 sps:$4 sm:$0xff]  }
   0x6   :  { %516 = vmatpush3.bf16.msra.mxu0 %v526_v2  ;;  %209 = vmatprep.subr.bf16.mxu1 %v530_v6  ;;  %v545_v17 = vld [vmem:[%s768_s3 + $0x64] ss:$8 sps:$4 sm:$0xff]  }
   0x9   :  { %518 = vmatmul.mubr.msk.bf16.vlgmr.msra.gmra.mrb[0].mxu0 %vm53_vm1, %v29_v7  ;;  %210 = vmatpush1.bf16.msra.mxu1 %v532_v8 }
   0xa   :  { %211 = vmatprep.subr.bf16.mxu1 %v533_v9 }
   0xd   :  { %212 = vmatpush1.bf16.msra.mxu1 %v535_v10 }
   0xe   :  { %213 = vmatprep.subr.bf16.mxu1 %v536_v11 }
  0x11   :  { %214 = vmatpush1.bf16.msra.mxu1 %v538_v12 }
  0x12   :  { %215 = vmatprep.subr.bf16.mxu1 %v539_v13 }
  0x15   :  { %216 = vmatpush1.bf16.msra.mxu1 %v541_v14 }
  0x16   :  { %217 = vmatprep.subr.bf16.mxu1 %v542_v15 }
  0x17   :  { %12 = vsyncpa [#allocation3], 0  ;;  %v547_v18 = vld [vmem:[%s768_s3 + $0x60] ss:$8 sps:$4 sm:$0xff]   ;;  %v548_v19 = vld [vmem:[%s768_s3 + $0x74] ss:$8 sps:$4 sm:$0xff]   ;;  %v117_v46 = vlaneseq }
  0x18   :  { %v550_v20 = vld [vmem:[%s768_s3 + $0x70] ss:$8 sps:$4 sm:$0xff]   ;;  %v597_v21 = vmov 0   ;;  %v551_v22 = vld [vmem:[%s770_s5 + $0x40] sm:$0xff]   ;;  %v553_v24 = vld [vmem:[%s770_s5 + $0x48] sm:$0xff]  }
  0x19   :  { %218 = vmatpush1.bf16.msra.mxu1 %v544_v16  ;;  %239 = vmatprep.mubr.bf16.mxu1 %v597_v21  ;;  %v552_v23 = vld [vmem:[%s770_s5] sm:$0xff]   ;;  %v554_v25 = vld [vmem:[%s770_s5 + $0x8] sm:$0xff]   ;;  %v555_v26 = vld [vmem:[%s770_s5 + $0x50] sm:$0xff]   ;;  %v118_v47 = vshrl.u32 %v117_v46, 7 }
  0x1a   :  { %219 = vmatprep.subr.bf16.mxu1 %v545_v17  ;;  %491 = vmatprep.subr.bf16.mxu0 %v551_v22  ;;  %v556_v27 = vld [vmem:[%s770_s5 + $0x10] sm:$0xff]   ;;  %v557_v28 = vld [vmem:[%s770_s5 + $0x58] sm:$0xff]   ;;  %v559_v30 = vld [vmem:[%s770_s5 + $0x60] sm:$0xff]  }
  0x1b   :  { %492 = vmatpush3.bf16.msra.mxu0 %v552_v23  ;;  %v558_v29 = vld [vmem:[%s770_s5 + $0x18] sm:$0xff]   ;;  %v560_v31 = vld [vmem:[%s770_s5 + $0x20] sm:$0xff]   ;;  %v561_v32 = vld [vmem:[%s770_s5 + $0x68] sm:$0xff]   ;;  %v119_v48 = vsub.s32 0, %v118_v47  ;;  %v123_v50 = vsub.s32 1, %v118_v47 }
  0x1c   :  { %493 = vmatprep.subr.bf16.mxu0 %v553_v24  ;;  %v562_v33 = vld [vmem:[%s770_s5 + $0x28] sm:$0xff]   ;;  %v451_v34 = vld [vmem:[%s767_s2] ss:$0 sm:$0xff]  ;;  %v563_v42 = vld [vmem:[%s770_s5 + $0x70] sm:$0xff]  }
  0x1d   :  { %220 = vmatpush1.bf16.msra.mxu1 %v547_v18  ;;  %v564_v43 = vld [vmem:[%s770_s5 + $0x30] sm:$0xff]   ;;  %v565_v44 = vld [vmem:[%s770_s5 + $0x78] sm:$0xff]   ;;  %v115_v49 = vld [vmem:[%s769_s4] sm:$0x3]  ;;  %s598_s4 = smov [#allocation2]  }
  0x1e   :  { %221 = vmatprep.subr.bf16.mxu1 %v548_v19  ;;  %v566_v45 = vld [vmem:[%s770_s5 + $0x38] sm:$0xff]   ;;  %v120_v51 = vrot.slane %v115_v49, %v119_v48  ;;  %v124_v52 = vrot.slane %v115_v49, %v123_v50  ;;  %v471_v1 = vld [vmem:[%s771_s6] ss:$0 sm:$0xff]  ;;  %s443_s21 = sshll.u32 %s598_s4, 4  ;;  %s444_s21 = int_to_ptr.vmem [resolvable:$true] %s443_s21 }
  0x1f   :  { %494 = vmatpush3.bf16.msra.mxu0 %v554_v25  ;;  %s571_s6 = scalar_lea.vmem %s444_s21, 128  ;;  %p576_p1 = scmp.lt.s32.totalorder %s444_s21, %s444_s21 }
  0x20   :  { %495 = vmatprep.subr.bf16.mxu0 %v555_v26  ;;  %p572_p0 = scmp.ne.s32.totalorder %s444_s21, %s571_s6  ;;  %p577_p2 = scmp.lt.s32.totalorder %s571_s6, %s571_s6 }
  0x21   :  { %222 = vmatpush1.bf16.msra.mxu1 %v550_v20 }
  0x22   :  { %p578_p3 = por %p577_p2, %p576_p1 }
  0x23   :  { %496 = vmatpush3.bf16.msra.mxu0 %v556_v27 }
  0x24   :  { %497 = vmatprep.subr.bf16.mxu0 %v557_v28  ;;  %p579_p4 = pnand %p578_p3, %p572_p0 }
  0x27   :  { %498 = vmatpush3.bf16.msra.mxu0 %v558_v29 }
  0x28   :  { %499 = vmatprep.subr.bf16.mxu0 %v559_v30 }
  0x2b   :  { %500 = vmatpush3.bf16.msra.mxu0 %v560_v31 }
  0x2c   :  { %501 = vmatprep.subr.bf16.mxu0 %v561_v32 }
  0x2f   :  { %502 = vmatpush3.bf16.msra.mxu0 %v562_v33 }
  0x30   :  { %503 = vmatprep.subr.bf16.mxu0 %v563_v42 }
  0x33   :  { %504 = vmatpush3.bf16.msra.mxu0 %v564_v43 }
  0x34   :  { %505 = vmatprep.subr.bf16.mxu0 %v565_v44 }
  0x37   :  { %506 = vmatpush3.bf16.msra.mxu0 %v566_v45 }
  0xdc   :  { %v91_v35 = vpop.f32.mrb[0].mxu0 }
  0xdd   :  { %v92_v36 = vadd.f32 %v451_v34, %v91_v35  ;;  %v519_v37 = vpop.f32.mrb[1].mxu0 }
  0xde   :  { %v94_v38 = vpop.f32.mrb[2].mxu0 }
  0xdf   :  { %v97_v39 = vmax.f32 %v92_v36, 0.0  ;;  %v520_v40 = vpop.f32.mrb[3].mxu0 }
  0xe1   :  { %v98_v41 = vpack.c.bf16 %v97_v39, %v97_v39 }
  0xe3   :  { %240 = vmatmul.mubr.bf16.vlgmr.msra.gmra.mrb[0].mxu1 %v98_v41 }
 0x1b6   :  { %v241_v53 = vpop.f32.mrb[0].mxu1 }
 0x1b7   :  { %v242_v54 = vadd.f32 %v241_v53, %v120_v51  ;;  %v243_v55 = vpop.f32.mrb[1].mxu1 }
 0x1b8   :  { %v244_v56 = vadd.f32 %v243_v55, %v124_v52  ;;  %v245_v57 = vpop.f32.mrb[2].mxu1 }
 0x1b9   :  { %v248_v58 = vmax.f32 %v242_v54, 0.0  ;;  %v246_v59 = vpop.f32.mrb[3].mxu1 }
 0x1ba   :  { %v249_v60 = vmax.f32 %v244_v56, 0.0 }
 0x1bb   :  { %v250_v62 = vpack.c.bf16 %v248_v58, %v248_v58 }
 0x1bc   :  { %v251_v61 = vpack.c.bf16 %v249_v60, %v249_v60 }
 0x1be   :  { %419 = vmatprep.mubr.bf16.mxu0 %v251_v61 }
 0x1bf   :  { %420 = vmatmul.mubr.bf16.vlgmr.msra.gmra.mrb[4].mxu0 %v250_v62 }
 0x292   :  { %v507_v63 = vpop.f32.mrb[4].mxu0 }
 0x293   :  { %v508_v0 = vpop.f32.mrb[5].mxu0 }
 0x294   :  { %v509_v2 = vadd.f32 %v508_v0, %v507_v63  ;;  %v510_v3 = vpop.f32.mrb[6].mxu0 }
 0x295   :  { %v511_v4 = vpop.f32.mrb[7].mxu0 }
 0x296   :  { %v422_v5 = vadd.f32 %v509_v2, %v471_v1 }
 0x298   :  { %427 = vmax.xlane.f32.xlu0 %v422_v5 }
 0x325   :  { %v428_v6 = vpop.xlane.xlu0 %427 }
 0x326   :  { %v429_v7 = vsub.f32 %v422_v5, %v428_v6 }
 0x328   :  { %v430_v8 = vmul.f32 1.442695, %v429_v7 }
 0x32a   :  { %567 = vpow2.f32 %v430_v8 }
 0x334   :  { %v568_v9 = vpop.eup %567 }
 0x335   :  { %432 = vadd.xlane.f32.xlu0 %v568_v9 }
 0x3c2   :  { %v433_v10 = vpop.xlane.xlu0 %432 }
 0x3c3   :  { %569 = vrcp.f32 %v433_v10 }
 0x3cd   :  { %v570_v11 = vpop.eup %569 }
 0x3ce   :  { %v435_v12 = vmul.f32 %v570_v11, %v568_v9 }
 0x3d0   :  { %436 = vst [vmem:[#allocation2] sm:$0xff] %v435_v12 }
 0x3d1   :  { %582 = shalt.err (!%p579_p4)
}
 0x3d2   :  { %s583_s24 = scalar_lea.hbm %s772_s7, 128 }
 0x3d3   :  { %p584_p5 = scmp.ne.s32.totalorder %s772_s7, %s583_s24  ;;  %p587_p6 = scmp.lt.u32.totalorder %s583_s24, %s772_s7 }
 0x3d5   :  { %p589_p7 = pnand %p587_p6, %p584_p5 }
 0x3d7   :  { %592 = shalt.err (!%p589_p7)
}
 0x3d8   :  { %446 = dma.vmem_to_hbm [thread:$0]  %s444_s21, 128, %s772_s7, [#allocation3]  }
 0x3d9   :  { %593 = dma.done.wait [#allocation3], 128  }
 0x3da   :  { %594 = vsyncadd [#allocation3], 4294967168 }
 0x3db   :  { %450 = vsyncpa [#allocation3], 1 }

</bundles_post_ra>
